<compile_context>
chip_gen: v5e
topology: v5e:2x2
jax: 0.10.0
libtpu: 0.0.40
codegen_flags: <defaults>
</compile_context>

<pallas_src>
import functools

import jax
import jax.numpy as jnp
from jax.experimental import pallas as pl
from jax.experimental.pallas import tpu as pltpu


_MIN_GRID_STEPS = 8  # enough row blocks for both v7x TensorCores + pipelining


def _round_down_to(x, m):
    return max(m, (x // m) * m)


def _round_up_to(x, m):
    return ((x + m - 1) // m) * m


# --------------------------------------------------------------------------
# Kernels
# --------------------------------------------------------------------------
def _cwd_kernel_single(s_ref, t_ref, o_ref, *, inv_tau):
    """Whole spatial axis resident in the tile: single-pass, restructured KL."""
    t = t_ref[...].astype(jnp.float32)
    s = s_ref[...].astype(jnp.float32)
    if inv_tau is not None:  # trace-time decision; constant multiply on the VPU
        t = t * inv_tau
        s = s * inv_tau

    t_shift = t - jnp.max(t, axis=-1, keepdims=True)
    s_shift = s - jnp.max(s, axis=-1, keepdims=True)
    e_t = jnp.exp(t_shift)                                    # EUP exp #1
    e_s = jnp.exp(s_shift)                                    # EUP exp #2
    sum_t = jnp.sum(e_t, axis=-1, keepdims=True)              # per-row scalars
    sum_s = jnp.sum(e_s, axis=-1, keepdims=True)
    num = jnp.sum(e_t * (t_shift - s_shift), axis=-1, keepdims=True)

    # Per-row: num / sum_t - (log sum_t - log sum_s). Divide/logs are per-row
    # only, so exact forms are essentially free (no approx reciprocal needed).
    row_kl = num / sum_t - (jnp.log(sum_t) - jnp.log(sum_s))
    o_ref[0, 0] = jnp.sum(row_kl)


def _cwd_kernel_ltiled(s_ref, t_ref, o_ref,
                       m_t_ref, m_s_ref, sum_t_ref, sum_s_ref, num_ref,
                       *, inv_tau):
    """Large-H*W path: online log-sum-exp over spatial chunks.

    Per-row f32 accumulators: running maxes m_t/m_s, rescaled exp-sums
    sum_t/sum_s, and the rescaled weighted numerator num = sum e_t * (t - s).
    Finalize: KL = num / sum_t - ((m_t + log sum_t) - (m_s + log sum_s)).
    """
    l = pl.program_id(1)

    @pl.when(l == 0)
    def _init():
        m_t_ref[...] = jnp.full(m_t_ref.shape, -jnp.inf, jnp.float32)
        m_s_ref[...] = jnp.full(m_s_ref.shape, -jnp.inf, jnp.float32)
        sum_t_ref[...] = jnp.zeros(sum_t_ref.shape, jnp.float32)
        sum_s_ref[...] = jnp.zeros(sum_s_ref.shape, jnp.float32)
        num_ref[...] = jnp.zeros(num_ref.shape, jnp.float32)

    t = t_ref[...].astype(jnp.float32)
    s = s_ref[...].astype(jnp.float32)
    if inv_tau is not None:
        t = t * inv_tau
        s = s * inv_tau

    m_t = jnp.maximum(m_t_ref[...], jnp.max(t, axis=-1, keepdims=True))
    m_s = jnp.maximum(m_s_ref[...], jnp.max(s, axis=-1, keepdims=True))
    a_t = jnp.exp(m_t_ref[...] - m_t)          # per-row rescale factors
    a_s = jnp.exp(m_s_ref[...] - m_s)
    e_t = jnp.exp(t - m_t)                     # EUP exp #1 (per element)
    e_s = jnp.exp(s - m_s)                     # EUP exp #2 (per element)

    sum_t_ref[...] = a_t * sum_t_ref[...] + jnp.sum(e_t, axis=-1, keepdims=True)
    sum_s_ref[...] = a_s * sum_s_ref[...] + jnp.sum(e_s, axis=-1, keepdims=True)
    num_ref[...] = a_t * num_ref[...] + jnp.sum(e_t * (t - s), axis=-1,
                                                keepdims=True)
    m_t_ref[...] = m_t
    m_s_ref[...] = m_s

    @pl.when(l == pl.num_programs(1) - 1)
    def _finalize():
        sum_t = sum_t_ref[...]
        sum_s = sum_s_ref[...]
        lse_t = m_t_ref[...] + jnp.log(sum_t)
        lse_s = m_s_ref[...] + jnp.log(sum_s)
        o_ref[0, 0] = jnp.sum(num_ref[...] / sum_t - (lse_t - lse_s))


# --------------------------------------------------------------------------
# Tiling / VMEM policy
# --------------------------------------------------------------------------
def _vmem_capacity_bytes():
    try:
        cap = int(pltpu.get_tpu_info().vmem_capacity_bytes)
        if cap > 0:
            return cap
    except Exception:  # non-TPU backends / older runtimes: assume 128 MiB parts
        pass
    return 128 * 1024 * 1024


def _choose_tiles(rows, L, itemsize, vmem_cap):
    """Pick (rows_blk, l_blk).

    Budget covers 2 inputs x 2 pipeline buffers (input dtype) PLUS ~6 f32
    per-element intermediates from the in-kernel upcast / exp chain, and is
    smaller on 64-MiB-VMEM parts (v7x) than on 128-MiB parts (v5e/v6e).
    """
    small_vmem = vmem_cap <= 96 * 1024 * 1024          # v7x-class (64 MiB)
    budget = (14 if small_vmem else 24) * 1024 * 1024
    bytes_per_elem = 4 * itemsize + 6 * 4

    max_rows_full_l = budget // (max(L, 1) * bytes_per_elem)
    if max_rows_full_l >= 8:
        # Common case: whole spatial axis per tile.
        l_blk = L
        rows_blk = min(512, int(max_rows_full_l), _round_up_to(rows, 8))
        # Keep >= ~8 row blocks when rows allow it (megacore + pipelining).
        steps_cap = _round_down_to(pl.cdiv(rows, _MIN_GRID_STEPS), 8)
        rows_blk = _round_down_to(min(rows_blk, steps_cap), 8)
    else:
        # Very large H*W: tile the spatial axis too (online-LSE kernel).
        rows_blk = 8
        l_blk = _round_down_to(int(budget // (rows_blk * bytes_per_elem)), 128)
        l_blk = min(l_blk, _round_up_to(L, 128))
    return rows_blk, l_blk


# --------------------------------------------------------------------------
# Wrapper
# --------------------------------------------------------------------------
def channel_wise_divergence(preds_S, preds_T, tau=1.0, loss_weight=1.0,
                            size_average=True, *, rows_block=None, l_block=None):
    assert preds_S.shape[-2:] == preds_T.shape[-2:]
    N, C, H, W = preds_S.shape
    rows = N * C
    L = H * W

    # Glue: flatten each channel map to a row (matches preds.view(-1, W*H)).
    # Inputs stream in their own dtype (keep producers in bf16 where possible:
    # halves HBM traffic; the kernel upcasts to f32 internally).
    s2d = preds_S.reshape(rows, L)
    t2d = preds_T.reshape(rows, L)

    itemsize = max(jnp.dtype(preds_S.dtype).itemsize,
                   jnp.dtype(preds_T.dtype).itemsize)
    vmem_cap = _vmem_capacity_bytes()
    small_vmem = vmem_cap <= 96 * 1024 * 1024
    rows_blk, l_blk = _choose_tiles(rows, L, itemsize, vmem_cap)
    if rows_block is not None:
        rows_blk = _round_down_to(int(rows_block), 8)
    if l_block is not None:
        l_blk = L if int(l_block) >= L else _round_down_to(int(l_block), 128)

    num_l_blocks = pl.cdiv(L, l_blk)

    # Spatial-axis padding (L-tiled path only): a large negative fill makes
    # exp(fill - max) == 0 and (t - s) == 0, so padded lanes add exactly 0 to
    # every accumulator.
    if num_l_blocks > 1:
        L_pad = num_l_blocks * l_blk
        if L_pad != L:
            fill = (-1e30 if float(jnp.finfo(s2d.dtype).max) > 1e30
                    else float(jnp.finfo(s2d.dtype).min) * 0.5)
            s2d = jnp.pad(s2d, ((0, 0), (0, L_pad - L)), constant_values=fill)
            t2d = jnp.pad(t2d, ((0, 0), (0, L_pad - L)), constant_values=fill)

    num_row_blocks = pl.cdiv(rows, rows_blk)
    rows_pad = num_row_blocks * rows_blk
    if rows_pad != rows:
        # Zero-padded rows: teacher and student softmaxes are identical
        # (uniform), so their KL contribution is exactly 0.
        s2d = jnp.pad(s2d, ((0, rows_pad - rows), (0, 0)))
        t2d = jnp.pad(t2d, ((0, rows_pad - rows), (0, 0)))

    inv_tau = None if float(tau) == 1.0 else float(1.0 / float(tau))

    # Deeper input buffering only where VMEM is plentiful (128-MiB parts) and
    # only when there are enough grid steps to benefit from it.
    total_steps = num_row_blocks * num_l_blocks
    use_buf3 = (not small_vmem) and total_steps >= 3

    def in_spec(index_map):
        if use_buf3:
            return pl.BlockSpec((rows_blk, l_blk), index_map,
                                pipeline_mode=pl.Buffered(3))
        return pl.BlockSpec((rows_blk, l_blk), index_map)

    vmem_limit = (36 if small_vmem else 48) * 1024 * 1024

    if num_l_blocks == 1:
        partials = pl.pallas_call(
            functools.partial(_cwd_kernel_single, inv_tau=inv_tau),
            out_shape=jax.ShapeDtypeStruct((num_row_blocks, 1), jnp.float32),
            grid_spec=pltpu.PrefetchScalarGridSpec(
                num_scalar_prefetch=0,
                grid=(num_row_blocks,),
                in_specs=[in_spec(lambda i: (i, 0)),
                          in_spec(lambda i: (i, 0))],
                # One scalar partial per row block -> no cross-step accumulator,
                # so the row axis is "parallel" (both TensorCores on v7x).
                out_specs=pl.BlockSpec((1, 1), lambda i: (i, 0),
                                       memory_space=pltpu.SMEM),
            ),
            compiler_params=pltpu.CompilerParams(
                dimension_semantics=("parallel",),
                vmem_limit_bytes=vmem_limit,
            ),
        )(s2d, t2d)
    else:
        partials = pl.pallas_call(
            functools.partial(_cwd_kernel_ltiled, inv_tau=inv_tau),
            out_shape=jax.ShapeDtypeStruct((num_row_blocks, 1), jnp.float32),
            grid_spec=pltpu.PrefetchScalarGridSpec(
                num_scalar_prefetch=0,
                grid=(num_row_blocks, num_l_blocks),   # reduction axis last
                in_specs=[in_spec(lambda i, l: (i, l)),
                          in_spec(lambda i, l: (i, l))],
                out_specs=pl.BlockSpec((1, 1), lambda i, l: (i, 0),
                                       memory_space=pltpu.SMEM),
                scratch_shapes=[pltpu.VMEM((rows_blk, 1), jnp.float32)] * 5,
            ),
            compiler_params=pltpu.CompilerParams(
                dimension_semantics=("parallel", "arbitrary"),
                vmem_limit_bytes=vmem_limit,
            ),
        )(s2d, t2d)

    loss = jnp.sum(partials) * (float(tau) ** 2)
    # The summed loss is already a scalar, so .mean() / .sum() are identity;
    # size_average is kept only for API parity with the PyTorch module.
    return loss_weight * loss


# --------------------------------------------------------------------------
# Pure-JAX reference + self-test
# --------------------------------------------------------------------------
def _reference(preds_S, preds_T, tau=1.0, loss_weight=1.0):
    N, C, H, W = preds_S.shape
    s = preds_S.reshape(-1, H * W).astype(jnp.float32) / tau
    t = preds_T.reshape(-1, H * W).astype(jnp.float32) / tau
    p_t = jax.nn.softmax(t, axis=1)
    loss = jnp.sum(p_t * (jax.nn.log_softmax(t, axis=1)
                          - jax.nn.log_softmax(s, axis=1))) * tau ** 2
    return loss_weight * loss


if __name__ == "__main__":
    key = jax.random.PRNGKey(0)
    k1, k2, k3, k4, k5, k6 = jax.random.split(key, 6)

    # Case 1: rows divisible by the block size, tau = 1, f32, single-L path.
    N, C, H, W = 2, 4, 16, 16
    preds_S = jax.random.normal(k1, (N, C, H, W), dtype=jnp.float32)
    preds_T = jax.random.normal(k2, (N, C, H, W), dtype=jnp.float32)
    out = jax.block_until_ready(
        channel_wise_divergence(preds_S, preds_T, tau=1.0, loss_weight=1.0))
    ref = _reference(preds_S, preds_T, tau=1.0, loss_weight=1.0)
    assert jnp.allclose(out, ref, rtol=1e-4, atol=1e-4), (out, ref)

    # Case 2: row count not a multiple of 8 (row padding), tau != 1, bf16
    # inputs (the recommended low-HBM-traffic caller contract).
    N2, C2 = 2, 5
    preds_S2 = jax.random.normal(k3, (N2, C2, H, W), dtype=jnp.bfloat16)
    preds_T2 = jax.random.normal(k4, (N2, C2, H, W), dtype=jnp.bfloat16)
    out2 = jax.block_until_ready(
        channel_wise_divergence(preds_S2, preds_T2, tau=2.0, loss_weight=0.5))
    ref2 = _reference(preds_S2, preds_T2, tau=2.0, loss_weight=0.5)
    assert jnp.allclose(out2, ref2, rtol=1e-3, atol=1e-3), (out2, ref2)

    # Case 3: force the L-tiled online-LSE path; L = 320 is not a multiple of
    # the forced 128-lane tile, so negative-fill column padding is exercised too.
    H3, W3 = 16, 20
    preds_S3 = jax.random.normal(k5, (2, 5, H3, W3), dtype=jnp.float32)
    preds_T3 = jax.random.normal(k6, (2, 5, H3, W3), dtype=jnp.float32)
    out3 = jax.block_until_ready(
        channel_wise_divergence(preds_S3, preds_T3, tau=1.5, loss_weight=1.0,
                                l_block=128))
    ref3 = _reference(preds_S3, preds_T3, tau=1.5, loss_weight=1.0)
    assert jnp.allclose(out3, ref3, rtol=1e-4, atol=1e-4), (out3, ref3)

    print("KERNEL_OK")
</pallas_src>

<mosaic_0001>
module attributes {stable_mosaic.version = 11 : i64} {
  func.func @_cwd_kernel_single(%arg0: i32, %arg1: memref<8x256xf32, #tpu.memory_space<vmem>>, %arg2: memref<8x256xf32, #tpu.memory_space<vmem>>, %arg3: memref<1x1xf32, #tpu.memory_space<smem>>) attributes {dimension_semantics = [#tpu.dimension_semantics<parallel>], iteration_bounds = array<i64: 1>, scalar_prefetch = 0 : i64, scratch_operands = 0 : i64, tpu.core_type = #tpu.core_type<tc>, window_params = [{transform_indices = @transform_0, window_bounds = array<i64: 8, 256>}, {transform_indices = @transform_1, window_bounds = array<i64: 8, 256>}, {transform_indices = @transform_2, window_bounds = array<i64: 1, 1>}]} {
    %c0 = arith.constant 0 : index
    %c0_0 = arith.constant 0 : index
    %0 = vector.load %arg2[%c0, %c0_0] : memref<8x256xf32, #tpu.memory_space<vmem>>, vector<8x256xf32>
    %c0_1 = arith.constant 0 : index
    %c0_2 = arith.constant 0 : index
    %1 = vector.load %arg1[%c0_1, %c0_2] : memref<8x256xf32, #tpu.memory_space<vmem>>, vector<8x256xf32>
    %cst = arith.constant dense<0xFF800000> : vector<8xf32>
    %2 = vector.multi_reduction <maximumf>, %0, %cst [1] : vector<8x256xf32> to vector<8xf32>
    %3 = vector.shape_cast %2 : vector<8xf32> to vector<8x1xf32>
    %4 = vector.broadcast %3 : vector<8x1xf32> to vector<8x256xf32>
    %5 = arith.subf %0, %4 : vector<8x256xf32>
    %cst_3 = arith.constant dense<0xFF800000> : vector<8xf32>
    %6 = vector.multi_reduction <maximumf>, %1, %cst_3 [1] : vector<8x256xf32> to vector<8xf32>
    %7 = vector.shape_cast %6 : vector<8xf32> to vector<8x1xf32>
    %8 = vector.broadcast %7 : vector<8x1xf32> to vector<8x256xf32>
    %9 = arith.subf %1, %8 : vector<8x256xf32>
    %10 = math.exp %5 : vector<8x256xf32>
    %11 = math.exp %9 : vector<8x256xf32>
    %cst_4 = arith.constant dense<0.000000e+00> : vector<8xf32>
    %12 = vector.multi_reduction <add>, %10, %cst_4 [1] : vector<8x256xf32> to vector<8xf32>
    %13 = vector.shape_cast %12 : vector<8xf32> to vector<8x1xf32>
    %cst_5 = arith.constant dense<0.000000e+00> : vector<8xf32>
    %14 = vector.multi_reduction <add>, %11, %cst_5 [1] : vector<8x256xf32> to vector<8xf32>
    %15 = vector.shape_cast %14 : vector<8xf32> to vector<8x1xf32>
    %16 = arith.subf %5, %9 : vector<8x256xf32>
    %17 = arith.mulf %10, %16 : vector<8x256xf32>
    %cst_6 = arith.constant dense<0.000000e+00> : vector<8xf32>
    %18 = vector.multi_reduction <add>, %17, %cst_6 [1] : vector<8x256xf32> to vector<8xf32>
    %19 = vector.shape_cast %18 : vector<8xf32> to vector<8x1xf32>
    %20 = arith.divf %19, %13 : vector<8x1xf32>
    %21 = math.log %13 : vector<8x1xf32>
    %22 = math.log %15 : vector<8x1xf32>
    %23 = arith.subf %21, %22 : vector<8x1xf32>
    %24 = arith.subf %20, %23 : vector<8x1xf32>
    %25 = vector.shape_cast %24 : vector<8x1xf32> to vector<1x8x1xf32>
    %cst_7 = arith.constant dense<0.000000e+00> : vector<1xf32>
    %26 = vector.multi_reduction <add>, %25, %cst_7 [1, 2] : vector<1x8x1xf32> to vector<1xf32>
    %27 = vector.shape_cast %26 : vector<1xf32> to vector<1x1x1xf32>
    %28 = vector.extract %27[0, 0, 0] : f32 from vector<1x1x1xf32>
    %c0_8 = arith.constant 0 : index
    %c0_9 = arith.constant 0 : index
    %29 = memref.load %arg3[%c0_8, %c0_9] : memref<1x1xf32, #tpu.memory_space<smem>>
    memref.store %28, %arg3[%c0_8, %c0_9] : memref<1x1xf32, #tpu.memory_space<smem>>
    return
  }
  func.func @transform_0(%arg0: i32) -> (i32, i32) {
    %c0_i32 = arith.constant 0 : i32
    %c0_i32_0 = arith.constant 0 : i32
    return %arg0, %c0_i32 : i32, i32
  }
  func.func @transform_1(%arg0: i32) -> (i32, i32) {
    %c0_i32 = arith.constant 0 : i32
    %c0_i32_0 = arith.constant 0 : i32
    return %arg0, %c0_i32 : i32, i32
  }
  func.func @transform_2(%arg0: i32) -> (i32, i32) {
    %c0_i32 = arith.constant 0 : i32
    %c0_i32_0 = arith.constant 0 : i32
    return %arg0, %c0_i32 : i32, i32
  }
}

</mosaic_0001>

<bundles_post_ra>
// kernel: tpu_custom_call.1
= control target key start
LH: loop header
LB: loop body
LE: loop exit
PB: predicated region body
PF: predicated region fallthrough
CT: control target
= control target key end

     0   :  { %7 = vsyncpa [#allocation3], 0  ;;  %s238_s0 = inlined_call_operand.hbm [shape: f32[8,256], index: 0, kind: input, shape index: {}]   ;;  %s239_s1 = inlined_call_operand.hbm [shape: f32[8,256], index: 1, kind: input, shape index: {}]   ;;  %s240_s2 = inlined_call_operand.hbm [shape: f32[1,1], index: 2, kind: output, shape index: {}]  }
   0x1   :  { %8 = vsyncpa [#allocation6], 0 }
   0x2   :  { %9 = vsyncpa [#allocation4], 0  ;;  %s15_s11 = sshll.u32 %s238_s0, 4  ;;  %s211_s12 = smov [#allocation2]   ;;  %s16_s11 = int_to_ptr.hbm [resolvable:$true] %s15_s11 }
   0x3   :  { %s17_s13 = sshll.u32 %s211_s12, 4  ;;  %s26_s16 = sshll.u32 %s239_s1, 4  ;;  %s18_s13 = int_to_ptr.vmem [resolvable:$true] %s17_s13  ;;  %s27_s16 = int_to_ptr.hbm [resolvable:$true] %s26_s16 }
   0x4   :  { %20 = dma.hbm_to_vmem [thread:$0]  %s16_s11, 256, %s18_s13, [#allocation3]  }
   0x5   :  { %s212_s17 = smov [#allocation5]  }
   0x6   :  { %s28_s18 = sshll.u32 %s212_s17, 4  ;;  %s29_s18 = int_to_ptr.vmem [resolvable:$true] %s28_s18 }
   0x7   :  { %31 = dma.hbm_to_vmem [thread:$0]  %s27_s16, 256, %s29_s18, [#allocation6]  }
   0x8   :  { %205 = dma.done.wait [#allocation3], 256  }
   0x9   :  { %206 = vsyncadd [#allocation3], 4294967040 }
   0xa   :  { %207 = dma.done.wait [#allocation6], 256  }
   0xb   :  { %208 = vsyncadd [#allocation6], 4294967040  ;;  %v40_v0 = vld [vmem:[#allocation5] sm:$0xff]  ;;  %v41_v1 = vld [vmem:[#allocation5 + $0x8] sm:$0xff]  ;;  %vm96_vm4 = vcmask 7168   ;;  %s114_s19 = sshll.u32 %s240_s2, 4  ;;  %s115_s19 = int_to_ptr.hbm [resolvable:$true] %s114_s19 }
   0xc   :  { %v44_v2 = vmax.f32 %v40_v0, %v41_v1  ;;  %v42_v3 = vld [vmem:[#allocation2] sm:$0xff]  ;;  %v43_v4 = vld [vmem:[#allocation2 + $0x8] sm:$0xff]  ;;  %s213_s21 = smov [#allocation7]  }
   0xd   :  { %v49_v5 = vmax.f32 %v42_v3, %v43_v4 }
   0xe   :  { %45 = vmax.xlane.f32.xlu0 %v44_v2 }
  0x16   :  { %50 = vmax.xlane.f32.xlu0 %v49_v5 }
  0x81   :  { %v46_v6 = vpop.xlane.xlu0 %45 }
  0x82   :  { %v47_v7 = vsub.f32 %v40_v0, %v46_v6  ;;  %v48_v8 = vsub.f32 %v41_v1, %v46_v6 }
  0x84   :  { %v54_v9 = vmul.f32 1.442695, %v47_v7  ;;  %v56_v10 = vmul.f32 1.442695, %v48_v8 }
  0x86   :  { %131 = vpow2.f32 %v54_v9 }
  0x87   :  { %133 = vpow2.f32 %v56_v10 }
  0x89   :  { %v51_v11 = vpop.xlane.xlu0 %50 }
  0x8a   :  { %v52_v12 = vsub.f32 %v42_v3, %v51_v11  ;;  %v53_v13 = vsub.f32 %v43_v4, %v51_v11 }
  0x8c   :  { %v132_v14 = vpop.eup %131  ;;  %v58_v15 = vmul.f32 1.442695, %v52_v12  ;;  %v60_v16 = vmul.f32 1.442695, %v53_v13  ;;  %v68_v17 = vsub.f32 %v47_v7, %v52_v12  ;;  %v69_v18 = vsub.f32 %v48_v8, %v53_v13 }
  0x8d   :  { %v134_v19 = vpop.eup %133 }
  0x8e   :  { %135 = vpow2.f32 %v58_v15  ;;  %v62_v20 = vadd.f32 %v134_v19, %v132_v14  ;;  %v70_v21 = vmul.f32 %v132_v14, %v68_v17  ;;  %v71_v22 = vmul.f32 %v134_v19, %v69_v18 }
  0x8f   :  { %137 = vpow2.f32 %v60_v16 }
  0x90   :  { %63 = vadd.xlane.f32.xlu1 %v62_v20  ;;  %v72_v23 = vadd.f32 %v71_v22, %v70_v21 }
  0x92   :  { %73 = vadd.xlane.f32.xlu2 %v72_v23 }
  0x94   :  { %v136_v24 = vpop.eup %135 }
  0x95   :  { %v138_v25 = vpop.eup %137 }
  0x96   :  { %v65_v26 = vadd.f32 %v138_v25, %v136_v24 }
  0x98   :  { %66 = vadd.xlane.f32.xlu1 %v65_v26 }
 0x103   :  { %v64_v27 = vpop.xlane.xlu1 %63 }
 0x104   :  { %139 = vrcp.f32 %v64_v27  ;;  %v86_v32 = vand.u32 2147483648, %v64_v27  ;;  %v84_v34 = vand.u32 2147483647, %v64_v27  ;;  %vm80_vm1 = vweird.f32 %v64_v27 }
 0x105   :  { %141 = vlog2.f32 %v64_v27  ;;  %v74_v43 = vpop.xlane.xlu2 %73 }
 0x106   :  { %v87_v38 = vor.u32 1.1754944e-38, %v86_v32  ;;  %vm85_vm3 = vcmp.eq.f32.partialorder %v84_v34, 8.507059e+37 }
 0x10a   :  { %v140_v28 = vpop.eup %139 }
 0x10b   :  { %v76_v29 = vmul.f32 %v140_v28, %v64_v27  ;;  %v67_v30 = vpop.xlane.xlu1 %66  ;;  %vm81_vm0 = vweird.f32 %v140_v28  ;;  %v142_v35 = vpop.eup %141 }
 0x10c   :  { %143 = vlog2.f32 %v67_v30  ;;  %vm82_vm2 = vmor %vm80_vm1, %vm81_vm0  ;;  %v91_v40 = vmul.f32 0.6931472, %v142_v35 }
 0x10d   :  { %v77_v31 = vsub.f32 1.0, %v76_v29 }
 0x10f   :  { %v78_v33 = vmul.f32 %v140_v28, %v77_v31 }
 0x111   :  { %v79_v36 = vadd.f32 %v140_v28, %v78_v33 }
 0x112   :  { %v144_v37 = vpop.eup %143 }
 0x113   :  { %v83_v39 = vsel %vm82_vm2, %v140_v28, %v79_v36  ;;  %v93_v41 = vmul.f32 0.6931472, %v144_v37 }
 0x114   :  { %v88_v42 = vsel %vm85_vm3, %v87_v38, %v83_v39 }
 0x115   :  { %v89_v44 = vmul.f32 %v88_v42, %v74_v43  ;;  %v94_v45 = vsub.f32 %v91_v40, %v93_v41 }
 0x117   :  { %v95_v46 = vsub.f32 %v89_v44, %v94_v45 }
 0x119   :  { %v97_v47 = vsel %vm96_vm4, %v95_v46, 0.0 }
 0x11a   :  { %98 = vadd.xlane.f32.xlu2 %v97_v47 }
 0x18d   :  { %v99_v48 = vpop.xlane.xlu2 %98 }
 0x18e   :  { %v100_v49 = vrot.slane %v99_v48, 4 }
 0x190   :  { %v101_v50 = vadd.f32 %v100_v49, %v99_v48 }
 0x192   :  { %v102_v51 = vrot.slane %v101_v50, 2 }
 0x194   :  { %v103_v52 = vadd.f32 %v102_v51, %v101_v50 }
 0x196   :  { %v104_v53 = vrot.slane %v103_v52, 1 }
 0x198   :  { %v105_v54 = vadd.f32 %v104_v53, %v103_v52 }
 0x19a   :  { %126 = vpush %v105_v54 }
 0x1cb   :  { %s127_s20 = spop %126 }
 0x1cc   :  { %108 = sst [smem:[#allocation7]] %s127_s20 }
 0x1cd   :  { %117 = dma.smem_to_hbm %s213_s21, 16, %s115_s19, [#allocation4]  }
 0x1ce   :  { %209 = dma.done.wait [#allocation4], 16  }
 0x1cf   :  { %210 = vsyncadd [#allocation4], 4294967280 }
 0x1d0   :  { %122 = sfence }
 0x1d1   :  { %123 = vsyncpa [#allocation3], 1 }
 0x1d2   :  { %124 = vsyncpa [#allocation6], 1 }
 0x1d3   :  { %125 = vsyncpa [#allocation4], 1 }

</bundles_post_ra>
